<compile_context>
chip_gen: v6e
topology: v6e:2x2x1
jax: 0.10.0
libtpu: 0.0.40
codegen_flags: <defaults>
</compile_context>

<pallas_src>
import jax
import jax.numpy as jnp
from jax.experimental import pallas as pl
from jax.experimental.pallas import tpu as pltpu

OUT_LANE_PAD = 128  # lane-dense output slab width


def _hybrid_kernel(x_ref, ut_ref, magg_ref,
                   wgcn_ref, bgcn_ref,
                   wgat_ref, aatt_ref, bgat_ref,
                   pu_ref, wout_ref, bout_ref,
                   out_ref):
    """Fused forward for one graph-batch:
    GFT -> GCNConv -> ReLU -> GATConv(1 head) -> ReLU -> (iGFT + mean pool folded) -> Linear."""
    f32 = jnp.float32

    # ---- GFT: x_hat = U^T x  (U^T precomputed once on host) ------------------
    xh = jnp.dot(ut_ref[...], x_ref[...], preferred_element_type=f32)        # [N, F]

    # ---- GCNConv: M_agg (x_hat W) + b, M_agg = (D^-1/2 (A+I) D^-1/2)^T -------
    h = jnp.dot(xh, wgcn_ref[...], preferred_element_type=f32)               # [N, Hg]
    h = jnp.dot(magg_ref[...], h, preferred_element_type=f32) + bgcn_ref[...]
    h = jnp.maximum(h, 0.0)

    # ---- GATConv (heads = 1), [dst, src] orientation --------------------------
    g = jnp.dot(h, wgat_ref[...], preferred_element_type=f32)                # [N, Hd]
    # one MXU matmul for both attention projections: [N, 2] = g @ [a_src | a_dst]
    scores = jnp.dot(g, aatt_ref[...], preferred_element_type=f32)           # [N, 2]
    a_src = scores[:, 0:1]                                                   # [N, 1]
    a_dst = scores[:, 1:2]                                                   # [N, 1]
    # Edge mask derived from the aggregation matrix: self-loops guarantee deg > 0,
    # so M_agg's nonzero pattern is exactly (A+I)^T (the [dst, src] edge mask).
    mask = magg_ref[...] > 0.0                                               # [N, N]
    e = a_dst + a_src.T                                                      # e[i, j] = a_dst[i] + a_src[j]
    e = jnp.where(e > 0, e, 0.2 * e)                                         # LeakyReLU(0.2)
    e = jnp.where(mask, e, f32(-1e30))                                       # mask non-edges
    e = e - jnp.max(e, axis=-1, keepdims=True)                               # softmax over sources (lane axis)
    e = jnp.exp(e)                                                           # masked entries underflow to exactly 0
    att = e / jnp.sum(e, axis=-1, keepdims=True)                             # exact denom (f32 parity)
    go = jnp.dot(att, g, preferred_element_type=f32) + bgat_ref[...]         # [N, Hd]
    go = jnp.maximum(go, 0.0)

    # ---- folded iGFT + global_mean_pool (PU = pool @ U), lane-padded Linear ---
    pooled = jnp.dot(pu_ref[...], go, preferred_element_type=f32)            # [G, Hd]
    out_ref[...] = (jnp.dot(pooled, wout_ref[...], preferred_element_type=f32)
                    + bout_ref[...])                                         # [G, 128] lane-dense store


# --------------------------------------------------------------------------- #
# One-time setup (called ONCE outside the forward loop; graph-static & params) #
# --------------------------------------------------------------------------- #
def precompute_graph_static(adj, U, pool):
    """Graph-static operands: U^T, GCN aggregation matrix (pre-transposed), folded iGFT+pool."""
    N = adj.shape[0]
    A_hat = adj + jnp.eye(N, dtype=jnp.float32)             # add self loops
    deg = jnp.sum(A_hat, axis=0)                            # in-degree (PyG gcn_norm)
    dis = 1.0 / jnp.sqrt(deg)
    M_agg = (dis[:, None] * A_hat * dis[None, :]).T          # [dst, src] GCN aggregation (also the edge mask)
    U_T = U.T
    PU = pool @ U                                            # folded iGFT + global_mean_pool, [G, N]
    return U_T, M_agg, PU


def prepare_params(params, output_dim):
    """One-time parameter prep: bias reshapes, stacked attention vectors, lane-padded output layer."""
    Wgcn, bgcn, Wgat, asrc, adst, bgat, Wout, bout = params
    a_both = jnp.stack([asrc, adst], axis=1)                                 # [Hd, 2]
    Hd = Wout.shape[0]
    Wout_pad = jnp.zeros((Hd, OUT_LANE_PAD), jnp.float32).at[:, :output_dim].set(Wout)
    bout_pad = jnp.zeros((1, OUT_LANE_PAD), jnp.float32).at[:, :output_dim].set(bout)
    return (Wgcn, bgcn.reshape(1, -1), Wgat, a_both, bgat.reshape(1, -1),
            Wout_pad, bout_pad)


# --------------------------------------------------------------------------- #
# Batched forward: one pallas_call over B independent graph-batches           #
# --------------------------------------------------------------------------- #
def hybrid_gat_gcn_igft_batched(xb, static, prepped, num_graphs, output_dim):
    """xb: [B, N, F] node features for B graph-batches sharing the same topology."""
    U_T, M_agg, PU = static
    Wgcn, bgcn, Wgat, a_both, bgat, Wout_pad, bout_pad = prepped
    B, N, F = xb.shape
    G = num_graphs

    def const_spec(a):
        nd = a.ndim
        return pl.BlockSpec(a.shape, lambda b, _nd=nd: (0,) * _nd)          # resident across the batch grid

    in_specs = [
        pl.BlockSpec((None, N, F), lambda b: (b, 0, 0)),                     # per-batch node features
        const_spec(U_T), const_spec(M_agg),
        const_spec(Wgcn), const_spec(bgcn),
        const_spec(Wgat), const_spec(a_both), const_spec(bgat),
        const_spec(PU), const_spec(Wout_pad), const_spec(bout_pad),
    ]

    out_pad = pl.pallas_call(
        _hybrid_kernel,
        out_shape=jax.ShapeDtypeStruct((B, G, OUT_LANE_PAD), jnp.float32),
        grid=(B,),
        in_specs=in_specs,
        out_specs=pl.BlockSpec((None, G, OUT_LANE_PAD), lambda b: (b, 0, 0)),
        compiler_params=pltpu.CompilerParams(
            dimension_semantics=("parallel",)),                              # v7x megacore shards batches
    )(xb, U_T, M_agg, Wgcn, bgcn, Wgat, a_both, bgat, PU, Wout_pad, bout_pad)

    return out_pad[:, :, :output_dim]                                        # slice away lane padding


# --------------------------------------------------------------------------- #
# Pure-JAX f32 reference mirroring PyG GCNConv / GATConv dense semantics      #
# --------------------------------------------------------------------------- #
def reference_forward(x, adj, U, pool, params):
    Wgcn, bgcn, Wgat, asrc, adst, bgat, Wout, bout = params
    N = adj.shape[0]
    A_hat = adj + jnp.eye(N, dtype=jnp.float32)
    xh = U.T @ x
    h = xh @ Wgcn
    deg = jnp.sum(A_hat, axis=0)
    dis = 1.0 / jnp.sqrt(deg)
    M = dis[:, None] * A_hat * dis[None, :]
    h = jnp.maximum(M.T @ h + bgcn, 0.0)
    g = h @ Wgat
    e = (g @ asrc)[:, None] + (g @ adst)[None, :]
    e = jnp.where(e > 0, e, 0.2 * e)
    e = jnp.where(A_hat > 0, e, -1e30)
    e = e - jnp.max(e, axis=0, keepdims=True)
    p = jnp.where(A_hat > 0, jnp.exp(e), 0.0)
    att = p / jnp.sum(p, axis=0, keepdims=True)
    go = jnp.maximum(att.T @ g + bgat, 0.0)
    y = U @ go
    return pool @ y @ Wout + bout


if __name__ == "__main__":
    num_features, gcn_hidden, gat_hidden, output_dim, heads = 8, 16, 16, 8, 1
    nodes_per_graph, num_graphs = 8, 2
    N = nodes_per_graph * num_graphs
    B = 8  # independent forwards (same topology) processed by one pallas_call

    # edge_index: bidirectional ring inside each graph (no self loops, no dups)
    src, dst = [], []
    for g in range(num_graphs):
        o = g * nodes_per_graph
        for i in range(nodes_per_graph):
            a, b = o + i, o + (i + 1) % nodes_per_graph
            src += [a, b]
            dst += [b, a]
    edge_index = jnp.array([src, dst], dtype=jnp.int32)
    batch = jnp.repeat(jnp.arange(num_graphs), nodes_per_graph)

    key = jax.random.PRNGKey(0)
    keys = jax.random.split(key, 9)
    xb = jax.random.normal(keys[0], (B, N, num_features), jnp.float32)
    Wgcn = 0.3 * jax.random.normal(keys[1], (num_features, gcn_hidden), jnp.float32)
    bgcn = 0.1 * jax.random.normal(keys[2], (gcn_hidden,), jnp.float32)
    Wgat = 0.3 * jax.random.normal(keys[3], (gcn_hidden, gat_hidden * heads), jnp.float32)
    asrc = 0.3 * jax.random.normal(keys[4], (gat_hidden * heads,), jnp.float32)
    adst = 0.3 * jax.random.normal(keys[5], (gat_hidden * heads,), jnp.float32)
    bgat = 0.1 * jax.random.normal(keys[6], (gat_hidden * heads,), jnp.float32)
    Wout = 0.3 * jax.random.normal(keys[7], (gat_hidden * heads, output_dim), jnp.float32)
    bout = 0.1 * jax.random.normal(keys[8], (output_dim,), jnp.float32)
    params = (Wgcn, bgcn, Wgat, asrc, adst, bgat, Wout, bout)

    # --- One-time glue (plain JAX): dense adjacency, Laplacian eigenbasis, pool matrix ---
    adj = jnp.zeros((N, N), jnp.float32).at[edge_index[0], edge_index[1]].set(1.0)
    laplacian = jnp.diag(jnp.sum(adj, axis=1)) - adj
    # TODO(synk): eigh has no Pallas equivalent; computed once in host JAX like the module does.
    _, U = jnp.linalg.eigh(laplacian)
    counts = jnp.bincount(batch, length=num_graphs).astype(jnp.float32)
    pool = (jnp.arange(num_graphs)[:, None] == batch[None, :]).astype(jnp.float32) / counts[:, None]

    # --- One-time setup (cached across forwards; NOT rebuilt per call) ---
    static = precompute_graph_static(adj, U, pool)
    prepped = prepare_params(params, output_dim)

    out = hybrid_gat_gcn_igft_batched(xb, static, prepped, num_graphs, output_dim)
    out = jax.block_until_ready(out)

    ref = jax.vmap(lambda xi: reference_forward(xi, adj, U, pool, params))(xb)
    max_err = float(jnp.max(jnp.abs(out - ref)))
    # All-f32 kernel with exact softmax denominator; tolerance kept generous only to
    # absorb platform-default matmul precision differences between kernel and XLA reference.
    assert jnp.allclose(out, ref, rtol=2e-2, atol=2e-2), f"max |err| = {max_err}"
    print("KERNEL_OK")
</pallas_src>

<mosaic_0001>
module attributes {stable_mosaic.version = 11 : i64} {
  func.func @_hybrid_kernel(%arg0: i32, %arg1: memref<1x16x8xf32, #tpu.memory_space<vmem>>, %arg2: memref<16x16xf32, #tpu.memory_space<vmem>>, %arg3: memref<16x16xf32, #tpu.memory_space<vmem>>, %arg4: memref<8x16xf32, #tpu.memory_space<vmem>>, %arg5: memref<1x16xf32, #tpu.memory_space<vmem>>, %arg6: memref<16x16xf32, #tpu.memory_space<vmem>>, %arg7: memref<16x2xf32, #tpu.memory_space<vmem>>, %arg8: memref<1x16xf32, #tpu.memory_space<vmem>>, %arg9: memref<2x16xf32, #tpu.memory_space<vmem>>, %arg10: memref<16x128xf32, #tpu.memory_space<vmem>>, %arg11: memref<1x128xf32, #tpu.memory_space<vmem>>, %arg12: memref<1x2x128xf32, #tpu.memory_space<vmem>>) attributes {dimension_semantics = [#tpu.dimension_semantics<parallel>], iteration_bounds = array<i64: 8>, scalar_prefetch = 0 : i64, scratch_operands = 0 : i64, tpu.core_type = #tpu.core_type<tc>, window_params = [{transform_indices = @transform_0, window_bounds = array<i64: 1, 16, 8>}, {pipeline_mode = #tpu.pipeline_mode<synchronous>, transform_indices = @transform_1, window_bounds = array<i64: 16, 16>}, {pipeline_mode = #tpu.pipeline_mode<synchronous>, transform_indices = @transform_2, window_bounds = array<i64: 16, 16>}, {pipeline_mode = #tpu.pipeline_mode<synchronous>, transform_indices = @transform_3, window_bounds = array<i64: 8, 16>}, {pipeline_mode = #tpu.pipeline_mode<synchronous>, transform_indices = @transform_4, window_bounds = array<i64: 1, 16>}, {pipeline_mode = #tpu.pipeline_mode<synchronous>, transform_indices = @transform_5, window_bounds = array<i64: 16, 16>}, {pipeline_mode = #tpu.pipeline_mode<synchronous>, transform_indices = @transform_6, window_bounds = array<i64: 16, 2>}, {pipeline_mode = #tpu.pipeline_mode<synchronous>, transform_indices = @transform_7, window_bounds = array<i64: 1, 16>}, {pipeline_mode = #tpu.pipeline_mode<synchronous>, transform_indices = @transform_8, window_bounds = array<i64: 2, 16>}, {pipeline_mode = #tpu.pipeline_mode<synchronous>, transform_indices = @transform_9, window_bounds = array<i64: 16, 128>}, {pipeline_mode = #tpu.pipeline_mode<synchronous>, transform_indices = @transform_10, window_bounds = array<i64: 1, 128>}, {transform_indices = @transform_11, window_bounds = array<i64: 1, 2, 128>}]} {
    %c0 = arith.constant 0 : index
    %c0_0 = arith.constant 0 : index
    %0 = vector.load %arg2[%c0, %c0_0] : memref<16x16xf32, #tpu.memory_space<vmem>>, vector<16x16xf32>
    %c0_1 = arith.constant 0 : index
    %c0_2 = arith.constant 0 : index
    %c0_3 = arith.constant 0 : index
    %1 = vector.load %arg1[%c0_1, %c0_2, %c0_3] : memref<1x16x8xf32, #tpu.memory_space<vmem>>, vector<1x16x8xf32>
    %2 = vector.shape_cast %1 : vector<1x16x8xf32> to vector<16x8xf32>
    %cst = arith.constant dense<0.000000e+00> : vector<16x8xf32>
    %3 = tpu.matmul %0, %2, %cst {dimension_numbers = #tpu.dot_dimension_numbers<[1], [0], [0], [1], [0, 0, 1, 1], [], []>} : vector<16x16xf32>, vector<16x8xf32>, vector<16x8xf32> -> vector<16x8xf32>
    %c0_4 = arith.constant 0 : index
    %c0_5 = arith.constant 0 : index
    %4 = vector.load %arg4[%c0_4, %c0_5] : memref<8x16xf32, #tpu.memory_space<vmem>>, vector<8x16xf32>
    %cst_6 = arith.constant dense<0.000000e+00> : vector<16x16xf32>
    %5 = tpu.matmul %3, %4, %cst_6 {dimension_numbers = #tpu.dot_dimension_numbers<[1], [0], [0], [1], [0, 0, 1, 1], [], []>} : vector<16x8xf32>, vector<8x16xf32>, vector<16x16xf32> -> vector<16x16xf32>
    %c0_7 = arith.constant 0 : index
    %c0_8 = arith.constant 0 : index
    %6 = vector.load %arg3[%c0_7, %c0_8] : memref<16x16xf32, #tpu.memory_space<vmem>>, vector<16x16xf32>
    %cst_9 = arith.constant dense<0.000000e+00> : vector<16x16xf32>
    %7 = tpu.matmul %6, %5, %cst_9 {dimension_numbers = #tpu.dot_dimension_numbers<[1], [0], [0], [1], [0, 0, 1, 1], [], []>} : vector<16x16xf32>, vector<16x16xf32>, vector<16x16xf32> -> vector<16x16xf32>
    %c0_10 = arith.constant 0 : index
    %c0_11 = arith.constant 0 : index
    %8 = vector.load %arg5[%c0_10, %c0_11] : memref<1x16xf32, #tpu.memory_space<vmem>>, vector<1x16xf32>
    %9 = vector.broadcast %8 : vector<1x16xf32> to vector<16x16xf32>
    %10 = arith.addf %7, %9 : vector<16x16xf32>
    %cst_12 = arith.constant 0.000000e+00 : f32
    %11 = vector.broadcast %cst_12 : f32 to vector<16x16xf32>
    %12 = arith.maximumf %10, %11 : vector<16x16xf32>
    %c0_13 = arith.constant 0 : index
    %c0_14 = arith.constant 0 : index
    %13 = vector.load %arg6[%c0_13, %c0_14] : memref<16x16xf32, #tpu.memory_space<vmem>>, vector<16x16xf32>
    %cst_15 = arith.constant dense<0.000000e+00> : vector<16x16xf32>
    %14 = tpu.matmul %12, %13, %cst_15 {dimension_numbers = #tpu.dot_dimension_numbers<[1], [0], [0], [1], [0, 0, 1, 1], [], []>} : vector<16x16xf32>, vector<16x16xf32>, vector<16x16xf32> -> vector<16x16xf32>
    %c0_16 = arith.constant 0 : index
    %c0_17 = arith.constant 0 : index
    %15 = vector.load %arg7[%c0_16, %c0_17] : memref<16x2xf32, #tpu.memory_space<vmem>>, vector<16x2xf32>
    %cst_18 = arith.constant dense<0.000000e+00> : vector<16x2xf32>
    %16 = tpu.matmul %14, %15, %cst_18 {dimension_numbers = #tpu.dot_dimension_numbers<[1], [0], [0], [1], [0, 0, 1, 1], [], []>} : vector<16x16xf32>, vector<16x2xf32>, vector<16x2xf32> -> vector<16x2xf32>
    %17 = vector.extract_strided_slice %16 {offsets = [0, 0], sizes = [16, 1], strides = [1, 1]} : vector<16x2xf32> to vector<16x1xf32>
    %18 = vector.extract_strided_slice %16 {offsets = [0, 1], sizes = [16, 1], strides = [1, 1]} : vector<16x2xf32> to vector<16x1xf32>
    %c0_19 = arith.constant 0 : index
    %c0_20 = arith.constant 0 : index
    %19 = vector.load %arg3[%c0_19, %c0_20] : memref<16x16xf32, #tpu.memory_space<vmem>>, vector<16x16xf32>
    %cst_21 = arith.constant 0.000000e+00 : f32
    %20 = vector.broadcast %cst_21 : f32 to vector<16x16xf32>
    %21 = arith.cmpf ogt, %19, %20 : vector<16x16xf32>
    %22 = tpu.transpose %17, [1, 0] : vector<16x1xf32> -> vector<1x16xf32>
    %23 = vector.broadcast %18 : vector<16x1xf32> to vector<16x16xf32>
    %24 = vector.broadcast %22 : vector<1x16xf32> to vector<16x16xf32>
    %25 = arith.addf %23, %24 : vector<16x16xf32>
    %cst_22 = arith.constant 0.000000e+00 : f32
    %26 = vector.broadcast %cst_22 : f32 to vector<16x16xf32>
    %27 = arith.cmpf ogt, %25, %26 : vector<16x16xf32>
    %cst_23 = arith.constant 2.000000e-01 : f32
    %28 = vector.broadcast %cst_23 : f32 to vector<16x16xf32>
    %29 = arith.mulf %28, %25 : vector<16x16xf32>
    %30 = arith.select %27, %25, %29 : vector<16x16xi1>, vector<16x16xf32>
    %cst_24 = arith.constant -1.000000e+30 : f32
    %31 = vector.broadcast %cst_24 : f32 to vector<16x16xf32>
    %32 = arith.select %21, %30, %31 : vector<16x16xi1>, vector<16x16xf32>
    %cst_25 = arith.constant dense<0xFF800000> : vector<16xf32>
    %33 = vector.multi_reduction <maximumf>, %32, %cst_25 [1] : vector<16x16xf32> to vector<16xf32>
    %34 = vector.shape_cast %33 : vector<16xf32> to vector<16x1xf32>
    %35 = vector.broadcast %34 : vector<16x1xf32> to vector<16x16xf32>
    %36 = arith.subf %32, %35 : vector<16x16xf32>
    %37 = math.exp %36 : vector<16x16xf32>
    %cst_26 = arith.constant dense<0.000000e+00> : vector<16xf32>
    %38 = vector.multi_reduction <add>, %37, %cst_26 [1] : vector<16x16xf32> to vector<16xf32>
    %39 = vector.shape_cast %38 : vector<16xf32> to vector<16x1xf32>
    %40 = vector.broadcast %39 : vector<16x1xf32> to vector<16x16xf32>
    %41 = arith.divf %37, %40 : vector<16x16xf32>
    %cst_27 = arith.constant dense<0.000000e+00> : vector<16x16xf32>
    %42 = tpu.matmul %41, %14, %cst_27 {dimension_numbers = #tpu.dot_dimension_numbers<[1], [0], [0], [1], [0, 0, 1, 1], [], []>} : vector<16x16xf32>, vector<16x16xf32>, vector<16x16xf32> -> vector<16x16xf32>
    %c0_28 = arith.constant 0 : index
    %c0_29 = arith.constant 0 : index
    %43 = vector.load %arg8[%c0_28, %c0_29] : memref<1x16xf32, #tpu.memory_space<vmem>>, vector<1x16xf32>
    %44 = vector.broadcast %43 : vector<1x16xf32> to vector<16x16xf32>
    %45 = arith.addf %42, %44 : vector<16x16xf32>
    %cst_30 = arith.constant 0.000000e+00 : f32
    %46 = vector.broadcast %cst_30 : f32 to vector<16x16xf32>
    %47 = arith.maximumf %45, %46 : vector<16x16xf32>
    %c0_31 = arith.constant 0 : index
    %c0_32 = arith.constant 0 : index
    %48 = vector.load %arg9[%c0_31, %c0_32] : memref<2x16xf32, #tpu.memory_space<vmem>>, vector<2x16xf32>
    %cst_33 = arith.constant dense<0.000000e+00> : vector<2x16xf32>
    %49 = tpu.matmul %48, %47, %cst_33 {dimension_numbers = #tpu.dot_dimension_numbers<[1], [0], [0], [1], [0, 0, 1, 1], [], []>} : vector<2x16xf32>, vector<16x16xf32>, vector<2x16xf32> -> vector<2x16xf32>
    %c0_34 = arith.constant 0 : index
    %c0_35 = arith.constant 0 : index
    %50 = vector.load %arg10[%c0_34, %c0_35] : memref<16x128xf32, #tpu.memory_space<vmem>>, vector<16x128xf32>
    %cst_36 = arith.constant dense<0.000000e+00> : vector<2x128xf32>
    %51 = tpu.matmul %49, %50, %cst_36 {dimension_numbers = #tpu.dot_dimension_numbers<[1], [0], [0], [1], [0, 0, 1, 1], [], []>} : vector<2x16xf32>, vector<16x128xf32>, vector<2x128xf32> -> vector<2x128xf32>
    %c0_37 = arith.constant 0 : index
    %c0_38 = arith.constant 0 : index
    %52 = vector.load %arg11[%c0_37, %c0_38] : memref<1x128xf32, #tpu.memory_space<vmem>>, vector<1x128xf32>
    %53 = vector.broadcast %52 : vector<1x128xf32> to vector<2x128xf32>
    %54 = arith.addf %51, %53 : vector<2x128xf32>
    %c0_39 = arith.constant 0 : index
    %c0_40 = arith.constant 0 : index
    %c0_41 = arith.constant 0 : index
    %55 = vector.load %arg12[%c0_39, %c0_40, %c0_41] : memref<1x2x128xf32, #tpu.memory_space<vmem>>, vector<1x2x128xf32>
    %56 = vector.shape_cast %55 : vector<1x2x128xf32> to vector<2x128xf32>
    %57 = vector.shape_cast %54 : vector<2x128xf32> to vector<1x2x128xf32>
    tpu.vector_store %arg12[%c0_39, %c0_40, %c0_41], %57 {strides = array<i32>} : memref<1x2x128xf32, #tpu.memory_space<vmem>>, vector<1x2x128xf32>,
    return
  }
  func.func @transform_0(%arg0: i32) -> (i32, i32, i32) {
    %c0_i32 = arith.constant 0 : i32
    %c0_i32_0 = arith.constant 0 : i32
    %c0_i32_1 = arith.constant 0 : i32
    return %arg0, %c0_i32, %c0_i32_0 : i32, i32, i32
  }
  func.func @transform_1(%arg0: i32) -> (i32, i32) {
    %c0_i32 = arith.constant 0 : i32
    %c0_i32_0 = arith.constant 0 : i32
    %c0_i32_1 = arith.constant 0 : i32
    return %c0_i32, %c0_i32_0 : i32, i32
  }
  func.func @transform_2(%arg0: i32) -> (i32, i32) {
    %c0_i32 = arith.constant 0 : i32
    %c0_i32_0 = arith.constant 0 : i32
    %c0_i32_1 = arith.constant 0 : i32
    return %c0_i32, %c0_i32_0 : i32, i32
  }
  func.func @transform_3(%arg0: i32) -> (i32, i32) {
    %c0_i32 = arith.constant 0 : i32
    %c0_i32_0 = arith.constant 0 : i32
    %c0_i32_1 = arith.constant 0 : i32
    return %c0_i32, %c0_i32_0 : i32, i32
  }
  func.func @transform_4(%arg0: i32) -> (i32, i32) {
    %c0_i32 = arith.constant 0 : i32
    %c0_i32_0 = arith.constant 0 : i32
    %c0_i32_1 = arith.constant 0 : i32
    return %c0_i32, %c0_i32_0 : i32, i32
  }
  func.func @transform_5(%arg0: i32) -> (i32, i32) {
    %c0_i32 = arith.constant 0 : i32
    %c0_i32_0 = arith.constant 0 : i32
    %c0_i32_1 = arith.constant 0 : i32
    return %c0_i32, %c0_i32_0 : i32, i32
  }
  func.func @transform_6(%arg0: i32) -> (i32, i32) {
    %c0_i32 = arith.constant 0 : i32
    %c0_i32_0 = arith.constant 0 : i32
    %c0_i32_1 = arith.constant 0 : i32
    return %c0_i32, %c0_i32_0 : i32, i32
  }
  func.func @transform_7(%arg0: i32) -> (i32, i32) {
    %c0_i32 = arith.constant 0 : i32
    %c0_i32_0 = arith.constant 0 : i32
    %c0_i32_1 = arith.constant 0 : i32
    return %c0_i32, %c0_i32_0 : i32, i32
  }
  func.func @transform_8(%arg0: i32) -> (i32, i32) {
    %c0_i32 = arith.constant 0 : i32
    %c0_i32_0 = arith.constant 0 : i32
    %c0_i32_1 = arith.constant 0 : i32
    return %c0_i32, %c0_i32_0 : i32, i32
  }
  func.func @transform_9(%arg0: i32) -> (i32, i32) {
    %c0_i32 = arith.constant 0 : i32
    %c0_i32_0 = arith.constant 0 : i32
    %c0_i32_1 = arith.constant 0 : i32
    return %c0_i32, %c0_i32_0 : i32, i32
  }
  func.func @transform_10(%arg0: i32) -> (i32, i32) {
    %c0_i32 = arith.constant 0 : i32
    %c0_i32_0 = arith.constant 0 : i32
    %c0_i32_1 = arith.constant 0 : i32
    return %c0_i32, %c0_i32_0 : i32, i32
  }
  func.func @transform_11(%arg0: i32) -> (i32, i32, i32) {
    %c0_i32 = arith.constant 0 : i32
    %c0_i32_0 = arith.constant 0 : i32
    %c0_i32_1 = arith.constant 0 : i32
    return %arg0, %c0_i32, %c0_i32_0 : i32, i32, i32
  }
}

</mosaic_0001>

<bundles_post_ra>
// kernel: tpu_custom_call.1
= control target key start
LH: loop header
LB: loop body
LE: loop exit
PB: predicated region body
PF: predicated region fallthrough
CT: control target
= control target key end

     0   :  { %s1659_s0 = inlined_call_operand.vmem [shape: f32[8,16,8], index: 0, kind: input, shape index: {}]   ;;  %s1660_s1 = inlined_call_operand.vmem [shape: f32[16,16], index: 1, kind: input, shape index: {}]   ;;  %s1661_s2 = inlined_call_operand.vmem [shape: f32[16,16], index: 2, kind: input, shape index: {}]   ;;  %s1662_s3 = inlined_call_operand.vmem [shape: f32[8,16], index: 3, kind: input, shape index: {}]   ;;  %s1663_s4 = inlined_call_operand.vmem [shape: f32[1,16], index: 4, kind: input, shape index: {}]   ;;  %s1664_s5 = inlined_call_operand.vmem [shape: f32[16,16], index: 5, kind: input, shape index: {}]   ;;  %s1665_s6 = inlined_call_operand.vmem [shape: f32[16,2], index: 6, kind: input, shape index: {}]   ;;  %s1666_s7 = inlined_call_operand.vmem [shape: f32[1,16], index: 7, kind: input, shape index: {}]   ;;  %s1667_s8 = inlined_call_operand.vmem [shape: f32[2,16], index: 8, kind: input, shape index: {}]   ;;  %s1668_s9 = inlined_call_operand.vmem [shape: f32[16,128], index: 9, kind: input, shape index: {}]   ;;  %s1669_s10 = inlined_call_operand.vmem [shape: f32[1,128], index: 10, kind: input, shape index: {}]   ;;  %s1670_s11 = inlined_call_operand.hbm [shape: f32[8,2,128], index: 11, kind: output, shape index: {}]  }
   0x1   :  { %1671 = sst [smem:[#allocation5_spill]] %s1659_s0 }
   0x2   :  { %1672 = sst [smem:[#allocation6_spill]] %s1660_s1 }
   0x3   :  { %16 = vsyncpa [#allocation3], 0 }
   0x4   :  { %18 = vsyncpa [#allocation3 + $0x1], 0  ;;  %s1501_s17 = smov 0   ;;  %s1503_s18 = smov 0  }
   0x5   :  { %s1505_s19 = smov 0   ;;  %s1507_s20 = smov 0  }
   0x6 LB: > { %s1522_s21 = sadd.s32 4294967295, %s1435_s20   ;;  %s1212_s22 = sadd.s32 4294967294, %s1435_s20   ;;  %s1435_s20 = sphi %s1507_s20, %s1680_s20   ;;  %s1431_s19 = sphi %s1505_s19, %s1679_s19   ;;  %s1427_s18 = sphi %s1503_s18, %s1678_s18   ;;  %s1423_s17 = sphi %s1501_s17, %s1677_s17  }
   0x7   : > { %s1526_s23 = sadd.s32 1, %s1435_s20   ;;  %s267_s24 = sadd.s32 1, %s1431_s19 }
   0x8   : > { %s264_s25 = ssub.s32 %s1435_s20, %s1526_s23  ;;  %p277_p0 = scmp.ne.s32.totalorder %s1431_s19, %s1427_s18 }
   0x9   : > { %p265_p1 = scmp.eq.s32.totalorder %s264_s25, 0  ;;  %p278_p2 = scmp.eq.s32.totalorder %s1522_s21, 7 }
   0xa   : > { %p283_p3 = scmp.ne.s32.totalorder %s1427_s18, %s1423_s17  ;;  %p284_p4 = scmp.eq.s32.totalorder %s1212_s22, 7 }
   0xb   : > { %s1537_s26 = scalar_select %p265_p1, %s1431_s19, %s267_s24  }
   0xc   : > { %p1539_p5 = por %p278_p2, %p277_p0  ;;  %p1543_p6 = por %p284_p4, %p283_p3 }
   0xd   : > { %p1215_p7 = scmp.ge.s32.totalorder %s1435_s20, 1  ;;  %p340_p8 = scmp.lt.s32.totalorder %s1435_s20, 9 }
   0xf   : > { %p341_p9 = pnand %p1215_p7, %p340_p8 }
  0x10   : > { %p380_p10 = scmp.lt.s32.totalorder (!%p341_p9), %s1522_s21, 7  ;;  %s1675_s1 = sld [smem:[#allocation6_spill]] (!%p341_p9) }
  0x11   : > { %344 = sbr.rel (%p341_p9) target bundleno = 2065 (0x811), region = 64  ;;  %s1676_s0 = sld [smem:[#allocation5_spill]] (!%p341_p9) }
  0x12   : > { %s1237_s22 = sshll.u32 (!%p341_p9), %s1522_s21, 5  ;;  %s1440_s15 = smov (!%p341_p9), [#allocation2]  }
  0x16   : > { %v385_v0 = vld [vmem:[%s1675_s1] sm:$0xff]  ;;  %vm389_vm0 = vcmask 130048   ;;  %s381_s12 = scalar_select %p380_p10, %s1522_s21, 7  ;;  %v386_v3 = vld [vmem:[%s1675_s1 + $0x8] sm:$0xff]  ;;  %vm472_vm1 = vcmask 64512   ;;  %v1437_v24 = vmov 1   ;;  %v856_v27 = vlaneseq }
  0x17   : > { %1274 = vmatprep.mubr.msk.f32.mxu0 %vm389_vm0, %v385_v0  ;;  %v471_v4 = vld [vmem:[%s1662_s3] sm:$0xff]  ;;  %v555_v10 = vld [vmem:[%s1661_s2 + $0x8] sm:$0xff]  ;;  %1366 = vset.pattern.permute.xlu0 %v1437_v24  ;;  %v1438_v60 = vmov 0.0   ;;  %vm1439_vm6 = vmmov 0   ;;  %s1379_s21 = sshll.u32 %s1440_s15, 4  ;;  %s1380_s21 = int_to_ptr.vmem [resolvable:$false] %s1379_s21 }
  0x18   : > { %s1240_s13 = sshll.u32 %s381_s12, 4  ;;  %1277 = vmatprep.subr.mxu1 %v471_v4  ;;  %v1568_v7 = vld [vmem:[%s1661_s2] sm:$0xff]  ;;  %v647_v11 = vld [vmem:[%s1664_s5 + $0x8] sm:$0xff]  ;;  %v857_v28 = vshrl.u32 %v856_v27, 7  ;;  %vm813_vm4 = vcmp.gt.f32.partialorder %v555_v10, 0.0  ;;  %s1624_s12 = scalar_lea.hbm %s1670_s11, %s1237_s22 }
  0x19   : > { %s384_s16 = scalar_lea.vmem %s1676_s0, %s1240_s13  ;;  %1278 = vmatpush3.msra.mxu1 %v471_v4  ;;  %v646_v12 = vld [vmem:[%s1664_s5] sm:$0xff]  ;;  %v730_v20 = vld [vmem:[%s1665_s6 + $0x8] sm:$0xff]  ;;  %vm812_vm2 = vcmp.gt.f32.partialorder %v1568_v7, 0.0  ;;  %s377_s13 = sand.u32 1, %s1427_s18  }
  0x1a   : > { %v388_v1 = vld [vmem:[%s384_s16 + $0x8] sm:$0xff]  ;;  %v387_v2 = vld [vmem:[%s384_s16] sm:$0xff]  ;;  %v858_v29 = vsub.s32 0, %v857_v28  ;;  %s1216_s14 = sshll.u32 %s377_s13, 1  ;;  %s1140_s0 = scalar_lea.sflag [#allocation3], %s377_s13 }
  0x1b   : > { %1270 = vmatprep.subr.mxu0 %v388_v1  ;;  %v1223_v13 = vld [vmem:[%s1663_s4] ss:$0 sm:$0xff]  ;;  %v1057_v61 = vld [vmem:[%s1668_s9 + $0x8] sm:$0xff]  ;;  %s379_s24 = scalar_lea.vmem [#allocation2], %s1216_s14  ;;  %s1381_s14 = scalar_lea.vmem %s1380_s21, 64 }
  0x1c   : > { %1271 = vmatpush3.msra.mxu0 %v388_v1  ;;  %v729_v21 = vld [vmem:[%s1665_s6] sm:$0xff]  ;;  %s1153_s25 = sshll.u32 %s379_s24, 4  ;;  %s1154_s25 = int_to_ptr.vmem [resolvable:$true] %s1153_s25 }
  0x1d   : > { %1272 = vmatprep.subr.mxu0 %v387_v2  ;;  %v1230_v62 = vld [vmem:[%s1666_s7] ss:$0 sm:$0xff]  ;;  %s1375_s1 = scalar_lea.vmem %s1154_s25, 32  ;;  %p1382_p0 = scmp.lt.s32.totalorder %s1154_s25, %s1380_s21 }
  0x1e   : > { %1273 = vmatpush3.msra.mxu0 %v387_v2  ;;  %p1376_p11 = scmp.ne.s32.totalorder %s1154_s25, %s1375_s1  ;;  %p1383_p1 = scmp.lt.s32.totalorder %s1381_s14, %s1375_s1 }
  0x1f   : > { %1275 = vmatmul.mubr.msk.f32.vlgmr.msra.gmra.mxu0 %vm389_vm0, %v386_v3  ;;  %1289 = vmatprep.subr.mxu0 %v647_v11 }
  0x20   : > { %1290 = vmatpush3.msra.mxu0 %v647_v11  ;;  %p1377_p12 = pnand %p1376_p11, %p1539_p5  ;;  %p1384_p2 = por %p1383_p1, %p1382_p0 }
  0x21   : > { %1291 = vmatprep.subr.mxu0 %v646_v12 }
  0x22   : > { %1292 = vmatpush3.msra.mxu0 %v646_v12  ;;  %p1378_p13 = pneg %p1377_p12 }
  0x24   : > { %p1385_p3 = pnand %p1384_p2, %p1378_p13 }
  0xdf   : > { %v1276_v5 = vpop.f32.mrf.mxu0 }
  0xe1   : > { %v462_v6 = vpop.f32.mrf.mxu0 }
  0xe2   : > { %1279 = vmatprep.mubr.msk.f32.mxu1 %vm472_vm1, %v462_v6  ;;  %v1056_v6 = vld [vmem:[%s1668_s9] sm:$0xff] }
  0xe3   : > { %1280 = vmatmul.mubr.msk.f32.vlgmr.msra.gmra.mxu1 %vm472_vm1, %v1276_v5  ;;  %v982_v5 = vld [vmem:[%s1667_s8] sm:$0x3] }
  0xe4   : > { %1286 = vmatprep.mubr.msk.f32.mxu1 %vm389_vm0, %v1568_v7 }
 0x1a3   : > { %v1281_v8 = vpop.f32.mrf.mxu1 }
 0x1a4   : > { %1282 = vmatprep.subr.mxu1 %v1281_v8 }
 0x1a5   : > { %v545_v9 = vpop.f32.mrf.mxu1  ;;  %1283 = vmatpush3.msra.mxu1 %v1281_v8 }
 0x1a6   : > { %1284 = vmatprep.subr.mxu1 %v545_v9 }
 0x1a7   : > { %1285 = vmatpush3.msra.mxu1 %v545_v9  ;;  %v1234_v9 = vld [vmem:[%s1669_s10] ss:$0 sm:$0xff] }
 0x1a8   : > { %1287 = vmatmul.mubr.msk.f32.vlgmr.msra.gmra.mxu1 %vm389_vm0, %v555_v10  ;;  %1296 = vmatprep.subr.mxu1 %v730_v20 }
 0x1a9   : > { %1297 = vmatpush3.msra.mxu1 %v730_v20 }
 0x1aa   : > { %1298 = vmatprep.subr.mxu1 %v729_v21 }
 0x1ab   : > { %1299 = vmatpush3.msra.mxu1 %v729_v21 }
 0x1ac   : > { %1310 = vmatprep.subr.mxu1 %v1438_v60 }
 0x268   : > { %v1288_v14 = vpop.f32.mrf.mxu1 }
 0x269   : > { %v641_v15 = vadd.f32 %v1288_v14, %v1223_v13 }
 0x26a   : > { %v635_v16 = vpop.f32.mrf.mxu1 }
 0x26b   : > { %v636_v17 = vadd.f32 %v1223_v13, %v635_v16  ;;  %v645_v19 = vmax.f32 %v641_v15, 0.0 }
 0x26d   : > { %v644_v18 = vmax.f32 %v636_v17, 0.0 }
 0x26f   : > { %1293 = vmatprep.mubr.msk.f32.mxu0 %vm389_vm0, %v644_v18 }
 0x270   : > { %1294 = vmatmul.mubr.msk.f32.vlgmr.msra.gmra.mxu0 %vm389_vm0, %v645_v19 }
 0x330   : > { %v1295_v22 = vpop.f32.mrf.mxu0 }
 0x331   : > { %1303 = vmatprep.subr.mxu0 %v1295_v22 }
 0x332   : > { %v720_v23 = vpop.f32.mrf.mxu0  ;;  %1304 = vmatpush3.msra.mxu0 %v1295_v22 }
 0x333   : > { %1300 = vmatprep.mubr.msk.f32.mxu1 %vm389_vm0, %v720_v23  ;;  %1305 = vmatprep.subr.mxu0 %v720_v23 }
 0x334   : > { %1301 = vmatmul.mubr.msk.f32.vlgmr.msra.gmra.mxu1 %vm389_vm0, %v1295_v22  ;;  %1306 = vmatpush3.msra.mxu0 %v720_v23 }
 0x335   : > { %1317 = vmatprep.subr.mxu0 %v1438_v60  ;;  %1314 = vmatprep.mubr.msk.f32.mxu1 %vm1439_vm6, %v1438_v60 }
 0x3f4   : > { %v1302_v25 = vpop.f32.mrf.mxu1 }
 0x3f6   : > { %v803_v26 = vpop.f32.mrf.mxu1 }
 0x3f7   : > { %814 = vxpose.xlu1.b32.start [1/2] (short) (narrow) %v803_v26, 8  ;;  %848 = vperm.xlu0 %1366, %v803_v26  }
 0x3fb   : > { %815 = vxpose.xlu1.b32.end [2/2] (short) (narrow) %v1302_v25, 8  ;;  %853 = vperm.xlu0 %1366, %v1302_v25  }
 0x472   : > { %v849_v30 = vpop.permute.xlu0 %848 }
 0x473   : > { %v830_v31 = vpop.trf.xlu1 }
 0x474   : > { %v859_v32 = vrot.slane %v830_v31, %v858_v29 }
 0x476   : > { %v860_v33 = vadd.f32 %v859_v32, %v849_v30  ;;  %v854_v34 = vpop.permute.xlu0 %853 }
 0x477   : > { %v861_v35 = vadd.f32 %v859_v32, %v854_v34 }
 0x478   : > { %vm862_vm3 = vcmp.gt.f32.partialorder %v860_v33, 0.0  ;;  %v864_v36 = vmul.f32 0.2, %v860_v33 }
 0x479   : > { %v865_v37 = vmul.f32 0.2, %v861_v35  ;;  %vm863_vm5 = vcmp.gt.f32.partialorder %v861_v35, 0.0 }
 0x47a   : > { %v866_v38 = vsel %vm862_vm3, %v860_v33, %v864_v36 }
 0x47b   : > { %v868_v39 = vsel %vm812_vm2, %v866_v38, -1e+30  ;;  %v867_v40 = vsel %vm863_vm5, %v861_v35, %v865_v37 }
 0x47c   : > { %v870_v41 = vsel %vm389_vm0, %v868_v39, -inf  ;;  %v869_v42 = vsel %vm813_vm4, %v867_v40, -1e+30 }
 0x47d   : > { %871 = vmax.xlane.f32.xlu0 %v870_v41  ;;  %v873_v43 = vsel %vm389_vm0, %v869_v42, -inf }
 0x47e   : > { %874 = vmax.xlane.f32.xlu1 %v873_v43 }
 0x506   : > { %v872_v44 = vpop.xlane.xlu0 %871 }
 0x507   : > { %v876_v45 = vsub.f32 %v868_v39, %v872_v44  ;;  %v875_v46 = vpop.xlane.xlu1 %874 }
 0x508   : > { %v877_v47 = vsub.f32 %v869_v42, %v875_v46 }
 0x509   : > { %v878_v48 = vmul.f32 1.442695, %v876_v45 }
 0x50a   : > { %v880_v49 = vmul.f32 1.442695, %v877_v47 }
 0x50b   : > { %1367 = vpow2.f32 %v878_v48 }
 0x50c   : > { %1369 = vpow2.f32 %v880_v49 }
 0x518   : > { %v1368_v50 = vpop.eup %1367 }
 0x519   : > { %v882_v51 = vsel %vm389_vm0, %v1368_v50, 0.0  ;;  %v1370_v52 = vpop.eup %1369 }
 0x51a   : > { %883 = vadd.xlane.f32.xlu0 %v882_v51  ;;  %v885_v53 = vsel %vm389_vm0, %v1370_v52, 0.0 }
 0x51e   : > { %886 = vadd.xlane.f32.xlu0 %v885_v53 }
 0x5a3   : > { %v884_v54 = vpop.xlane.xlu0 %883 }
 0x5a4   : > { %1371 = vrcp.f32 %v884_v54 }
 0x5a7   : > { %v887_v55 = vpop.xlane.xlu0 %886 }
 0x5a8   : > { %1373 = vrcp.f32 %v887_v55 }
 0x5b1   : > { %v1372_v56 = vpop.eup %1371 }
 0x5b2   : > { %v889_v57 = vmul.f32 %v1372_v56, %v1368_v50 }
 0x5b4   : > { %1307 = vmatprep.mubr.msk.f32.mxu0 %vm389_vm0, %v889_v57 }
 0x5b5   : > { %v1374_v58 = vpop.eup %1373 }
 0x5b6   : > { %v891_v59 = vmul.f32 %v1374_v58, %v1370_v52 }
 0x5b8   : > { %1308 = vmatmul.mubr.msk.f32.vlgmr.msra.gmra.mxu0 %vm389_vm0, %v891_v59 }
 0x5b9   : > { %1321 = vmatprep.mubr.msk.f32.mxu0 %vm1439_vm6, %v1438_v60  ;;  %1318 = vmatpush3.msra.mxu0 %v1057_v61 }
 0x5ba   : > { %1319 = vmatprep.subr.mxu0 %v1438_v60 }
 0x5bb   : > { %1320 = vmatpush3.msra.mxu0 %v1056_v6 }
 0x678   : > { %v1309_v63 = vpop.f32.mrf.mxu0 }
 0x679   : > { %v977_v0 = vadd.f32 %v1309_v63, %v1230_v62 }
 0x67a   : > { %v971_v1 = vpop.f32.mrf.mxu0 }
 0x67b   : > { %v981_v2 = vmax.f32 %v977_v0, 0.0  ;;  %v972_v3 = vadd.f32 %v1230_v62, %v971_v1 }
 0x67d   : > { %v980_v4 = vmax.f32 %v972_v3, 0.0  ;;  %1311 = vmatpush3.msra.mxu1 %v981_v2 }
 0x67e   : > { %1312 = vmatprep.subr.mxu1 %v1438_v60 }
 0x67f   : > { %1313 = vmatpush3.msra.mxu1 %v980_v4 }
 0x680   : > { %1315 = vmatmul.mubr.msk.f32.vlgmr.msra.gmra.mxu1 %vm389_vm0, %v982_v5 }
 0x740   : > { %v1052_v7 = vpop.f32.mrf.mxu1 }
 0x741   : > { %1322 = vmatmul.mubr.msk.f32.vlgmr.msra.gmra.mxu0 %vm389_vm0, %v1052_v7 }
 0x742   : > { %v1316_v8 = vpop.f32.mrf.mxu1 }
 0x801   : > { %v1134_v10 = vpop.f32.mrf.mxu0 }
 0x802   : > { %v1135_v11 = vadd.f32 %v1234_v9, %v1134_v10 }
 0x803   : > { %v1323_v12 = vpop.f32.mrf.mxu0 }
 0x804   : > { %1138 = vst [vmem:[%s379_s24] sm:$0x3] %v1135_v11 }
 0x805   : > { %1388 = shalt.err (!%p1385_p3)
}
 0x806   : > { %s1389_s16 = scalar_lea.hbm %s1624_s12, 32  ;;  %s1393_s24 = scalar_lea.hbm %s1670_s11, 256 }
 0x807   : > { %p1390_p4 = scmp.ne.s32.totalorder %s1624_s12, %s1389_s16  ;;  %p1394_p9 = scmp.lt.s32.totalorder %s1624_s12, %s1670_s11 }
 0x808   : > { %p1395_p10 = scmp.lt.s32.totalorder %s1393_s24, %s1389_s16 }
 0x809   : > { %p1391_p7 = pnand %p1390_p4, %p1539_p5 }
 0x80a   : > { %p1396_p11 = por %p1395_p10, %p1394_p9 }
 0x80b   : > { %p1392_p8 = pneg %p1391_p7 }
 0x80d   : > { %p1397_p12 = pnand %p1396_p11, %p1392_p8 }
 0x80f   : > { %1400 = shalt.err (!%p1397_p12)
}
 0x810   : > { %1324 = dma.vmem_to_hbm [thread:$0]  (%p1539_p5), %s1154_s25, 32, %s1624_s12, %s1140_s0  }
 0x811 PF: > { %p1330_p13 = scmp.ge.s32.totalorder %s1435_s20, 2  ;;  %s1165_s1 = sand.u32 1, %s1423_s17  }
 0x812   : > { %s1166_s15 = scalar_lea.sflag [#allocation3], %s1165_s1 }
 0x813   : > { %p1327_p0 = pnand %p1330_p13, %p1543_p6 }
 0x815   : > { %p1328_p1 = pneg %p1327_p0 }
 0x817   : > { %1418 = dma.done.wait (%p1328_p1), %s1166_s15, 32  }
 0x818   : > { %1420 = vsyncadd (%p1328_p1), %s1166_s15, 4294967264  ;;  %p21_p2 = scmp.ge.s32.totalorder %s1526_s23, 10   ;;  %s1677_s17 = smov %s1427_s18 }
 0x819   : > { %s1678_s18 = smov %s1431_s19  ;;  %s1679_s19 = smov %s1537_s26 }
 0x81a   : > { %s1680_s20 = smov %s1526_s23  ;;  %23 = sbr.rel (!%p21_p2) target bundleno = 6 (0x6), region = 99 }
 0x81f   :  { %1171 = vsyncpa [#allocation3], 1 }
 0x820   :  { %1173 = vsyncpa [#allocation3 + $0x1], 1 }

</bundles_post_ra>
